<compile_context>
chip_gen: v5e
topology: v5e:2x2
jax: 0.10.0
libtpu: 0.0.40
codegen_flags: <defaults>
</compile_context>

<pallas_src>
import functools

import jax
import jax.numpy as jnp
from jax import lax
from jax.experimental import pallas as pl
from jax.experimental.pallas import tpu as pltpu

EPS = 1e-6            # matches the module spec (torch default would be 1e-5)
NUM_GROUPS = 32


def _group_norm_kernel(x_ref, gb_ref, o_ref, *, cpg, hw, eps):
    # x_ref : (R, cpg*HW)  one row = all channels*pixels of one (batch, group)
    # gb_ref: (R, 2*cpg)   [:, :cpg] = gamma per channel-in-group, [:, cpg:] = beta
    # o_ref : (R, cpg*HW)
    rows = x_ref.shape[0]
    inv_count = 1.0 / float(cpg * hw)

    # Pass 1: per-row (== per-group) sum / sum-of-squares, accumulated per
    # channel chunk so no full-block f32 temporary stays live.
    s1 = jnp.zeros((rows, 1), jnp.float32)
    s2 = jnp.zeros((rows, 1), jnp.float32)
    for c in range(cpg):
        xc = x_ref[:, c * hw:(c + 1) * hw].astype(jnp.float32)
        s1 = s1 + jnp.sum(xc, axis=-1, keepdims=True)
        s2 = s2 + jnp.sum(xc * xc, axis=-1, keepdims=True)

    mean = s1 * inv_count
    var = jnp.maximum(s2 * inv_count - mean * mean, 0.0)   # clamp cancellation
    inv = lax.rsqrt(var + eps)                              # (R, 1)

    # Pass 2: folded affine, one lane-aligned (R, HW) chunk per channel.
    for c in range(cpg):
        gamma_c = gb_ref[:, c:c + 1].astype(jnp.float32)         # (R, 1)
        beta_c = gb_ref[:, cpg + c:cpg + c + 1].astype(jnp.float32)
        scale = gamma_c * inv
        shift = beta_c - mean * scale
        xc = x_ref[:, c * hw:(c + 1) * hw].astype(jnp.float32)
        o_ref[:, c * hw:(c + 1) * hw] = (xc * scale + shift).astype(o_ref.dtype)


def _choose_block_rows(rows, row_bytes, itemsize,
                       min_steps=4, target_bytes=8 * 1024 * 1024,
                       max_rows=1024):
    """Pick the row-block size R.

    Constraints / preferences (in order):
      * R divides rows and is a multiple of the dtype's sublane packing
        (8 rows for 4-byte, 16 for 2-byte, 32 for 1-byte elements).
      * grid = rows // R has >= min_steps steps (pipelined steady state) and
        is even (v7x two-TC sharding), block <= target_bytes, R <= max_rows.
      * Subject to that, R is as large as possible (big contiguous DMAs).
    """
    pack = max(8 * (4 // max(itemsize, 1)), 8)
    cands = [d for d in range(pack, rows + 1, pack) if rows % d == 0]
    if not cands:
        return rows  # rows < one packed tile of sublanes; single block.

    def fits(d):
        return d <= max_rows and d * row_bytes <= target_bytes

    tiers = (
        lambda d: fits(d) and rows // d >= min_steps and (rows // d) % 2 == 0,
        lambda d: fits(d) and rows // d >= min_steps,
        lambda d: fits(d) and rows // d >= 2,
        lambda d: fits(d),
    )
    for pred in tiers:
        good = [d for d in cands if pred(d)]
        if good:
            return max(good)
    # TODO(synk): for very large cpg*H*W even the smallest aligned row block
    # exceeds the VMEM budget; that regime needs a spatial grid axis marked
    # "arbitrary" with s1/s2 accumulator scratch and a second normalize pass.
    return min(cands)


def group_norm(x, gamma, beta, num_groups=NUM_GROUPS, eps=EPS):
    """x: (N, C, H, W) NCHW; gamma, beta: (C,).

    Matches torch.nn.GroupNorm(num_groups, C, eps=1e-6, affine=True) as used
    in the module spec (note: eps=1e-6, not torch's default 1e-5).
    """
    N, C, H, W = x.shape
    assert C % num_groups == 0, "channels must be divisible by num_groups"
    cpg = C // num_groups
    HW = H * W
    rows = N * num_groups           # one row per (batch, group)
    cols = cpg * HW
    itemsize = jnp.dtype(x.dtype).itemsize

    R = _choose_block_rows(rows, cols * itemsize, itemsize)
    grid = (rows // R,)

    # Free reshape: (N, C, H, W) row-major == (N*G, cpg*HW) row-major.
    x2 = x.reshape(rows, cols)

    # Per-row affine params, lane-oriented: row r = (batch n, group g),
    # lane c in [0, cpg) -> gamma/beta of channel g*cpg + c.
    g2 = jnp.tile(gamma.astype(jnp.float32).reshape(num_groups, cpg), (N, 1))
    b2 = jnp.tile(beta.astype(jnp.float32).reshape(num_groups, cpg), (N, 1))
    gb = jnp.concatenate([g2, b2], axis=-1)              # (rows, 2*cpg)

    # VMEM budget: double-buffered x in + out blocks, f32 chunk temporaries,
    # the (lane-padded) gb blocks, plus slack.  Capped at 48 MiB to leave
    # headroom on v7x's 64 MiB per-TC VMEM.
    block_bytes = R * cols * itemsize
    vmem_need = (4 * block_bytes            # in + out, double buffered
                 + 2 * R * HW * 4           # live f32 chunk temporaries
                 + 4 * R * 128 * 4          # gb blocks (lane dim pads to 128)
                 + (1 << 20))               # slack
    vmem_limit = int(min(max(vmem_need, 8 * 1024 * 1024), 48 * 1024 * 1024))

    # TODO(synk): if HW % 128 != 0 the per-channel chunk slices are not
    # lane-aligned (correct, but stores become masked); padding HW to a
    # multiple of 128 in the wrapper would recover fully unmasked stores.
    out = pl.pallas_call(
        functools.partial(_group_norm_kernel, cpg=cpg, hw=HW, eps=eps),
        out_shape=jax.ShapeDtypeStruct((rows, cols), x.dtype),
        grid=grid,
        in_specs=[
            pl.BlockSpec((R, cols), lambda b: (b, 0)),       # x rows
            pl.BlockSpec((R, 2 * cpg), lambda b: (b, 0)),    # gamma|beta
        ],
        out_specs=pl.BlockSpec((R, cols), lambda b: (b, 0)),
        compiler_params=pltpu.CompilerParams(
            dimension_semantics=("parallel",),
            vmem_limit_bytes=vmem_limit,
        ),
    )(x2, gb)
    return out.reshape(N, C, H, W)


def group_norm_ref(x, gamma, beta, num_groups=NUM_GROUPS, eps=EPS):
    # Pure-JAX reference replicating torch.nn.GroupNorm semantics.
    N, C, H, W = x.shape
    xr = x.reshape(N, num_groups, -1).astype(jnp.float32)
    mean = xr.mean(axis=-1, keepdims=True)
    var = ((xr - mean) ** 2).mean(axis=-1, keepdims=True)
    xn = ((xr - mean) / jnp.sqrt(var + eps)).reshape(N, C, H, W)
    out = xn * gamma.reshape(1, C, 1, 1) + beta.reshape(1, C, 1, 1)
    return out.astype(x.dtype)


if __name__ == "__main__":
    key = jax.random.PRNGKey(0)
    kx, kg, kb = jax.random.split(key, 3)

    N, C, H, W = 2, 64, 16, 16   # C must be a multiple of 32 groups
    x = jax.random.normal(kx, (N, C, H, W), dtype=jnp.float32)

    # Deterministic synthetic affine params (perturbed so the affine path is
    # actually exercised; PyTorch default init would be ones/zeros).
    gamma = 1.0 + 0.1 * jax.random.normal(kg, (C,), dtype=jnp.float32)
    beta = 0.1 * jax.random.normal(kb, (C,), dtype=jnp.float32)

    out = jax.block_until_ready(group_norm(x, gamma, beta))
    ref = group_norm_ref(x, gamma, beta)

    assert out.shape == (N, C, H, W)
    assert jnp.allclose(out, ref, atol=2e-4, rtol=2e-4), (
        "mismatch vs reference, max abs diff = "
        f"{float(jnp.max(jnp.abs(out - ref)))}")
    print("KERNEL_OK")
</pallas_src>

<mosaic_0001>
module attributes {stable_mosaic.version = 11 : i64} {
  func.func @_group_norm_kernel(%arg0: i32, %arg1: memref<16x512xf32, #tpu.memory_space<vmem>>, %arg2: memref<16x4xf32, #tpu.memory_space<vmem>>, %arg3: memref<16x512xf32, #tpu.memory_space<vmem>>) attributes {dimension_semantics = [#tpu.dimension_semantics<parallel>], iteration_bounds = array<i64: 4>, scalar_prefetch = 0 : i64, scratch_operands = 0 : i64, tpu.core_type = #tpu.core_type<tc>, window_params = [{transform_indices = @transform_0, window_bounds = array<i64: 16, 512>}, {transform_indices = @transform_1, window_bounds = array<i64: 16, 4>}, {transform_indices = @transform_2, window_bounds = array<i64: 16, 512>}]} {
    %cst = arith.constant 0.000000e+00 : f32
    %0 = vector.broadcast %cst : f32 to vector<16x1xf32>
    %cst_0 = arith.constant 0.000000e+00 : f32
    %1 = vector.broadcast %cst_0 : f32 to vector<16x1xf32>
    %c0 = arith.constant 0 : index
    %c0_1 = arith.constant 0 : index
    %2 = vector.load %arg1[%c0, %c0_1] : memref<16x512xf32, #tpu.memory_space<vmem>>, vector<16x256xf32>
    %cst_2 = arith.constant dense<0.000000e+00> : vector<16xf32>
    %3 = vector.multi_reduction <add>, %2, %cst_2 [1] : vector<16x256xf32> to vector<16xf32>
    %4 = vector.shape_cast %3 : vector<16xf32> to vector<16x1xf32>
    %5 = arith.addf %0, %4 : vector<16x1xf32>
    %6 = arith.mulf %2, %2 : vector<16x256xf32>
    %cst_3 = arith.constant dense<0.000000e+00> : vector<16xf32>
    %7 = vector.multi_reduction <add>, %6, %cst_3 [1] : vector<16x256xf32> to vector<16xf32>
    %8 = vector.shape_cast %7 : vector<16xf32> to vector<16x1xf32>
    %9 = arith.addf %1, %8 : vector<16x1xf32>
    %c0_4 = arith.constant 0 : index
    %c256 = arith.constant 256 : index
    %10 = vector.load %arg1[%c0_4, %c256] : memref<16x512xf32, #tpu.memory_space<vmem>>, vector<16x256xf32>
    %cst_5 = arith.constant dense<0.000000e+00> : vector<16xf32>
    %11 = vector.multi_reduction <add>, %10, %cst_5 [1] : vector<16x256xf32> to vector<16xf32>
    %12 = vector.shape_cast %11 : vector<16xf32> to vector<16x1xf32>
    %13 = arith.addf %5, %12 : vector<16x1xf32>
    %14 = arith.mulf %10, %10 : vector<16x256xf32>
    %cst_6 = arith.constant dense<0.000000e+00> : vector<16xf32>
    %15 = vector.multi_reduction <add>, %14, %cst_6 [1] : vector<16x256xf32> to vector<16xf32>
    %16 = vector.shape_cast %15 : vector<16xf32> to vector<16x1xf32>
    %17 = arith.addf %9, %16 : vector<16x1xf32>
    %cst_7 = arith.constant 0.001953125 : f32
    %18 = vector.broadcast %cst_7 : f32 to vector<16x1xf32>
    %19 = arith.mulf %13, %18 : vector<16x1xf32>
    %cst_8 = arith.constant 0.001953125 : f32
    %20 = vector.broadcast %cst_8 : f32 to vector<16x1xf32>
    %21 = arith.mulf %17, %20 : vector<16x1xf32>
    %22 = arith.mulf %19, %19 : vector<16x1xf32>
    %23 = arith.subf %21, %22 : vector<16x1xf32>
    %cst_9 = arith.constant 0.000000e+00 : f32
    %24 = vector.broadcast %cst_9 : f32 to vector<16x1xf32>
    %25 = arith.maximumf %23, %24 : vector<16x1xf32>
    %cst_10 = arith.constant 9.99999997E-7 : f32
    %26 = vector.broadcast %cst_10 : f32 to vector<16x1xf32>
    %27 = arith.addf %25, %26 : vector<16x1xf32>
    %28 = math.rsqrt %27 : vector<16x1xf32>
    %c0_11 = arith.constant 0 : index
    %c0_12 = arith.constant 0 : index
    %29 = vector.load %arg2[%c0_11, %c0_12] : memref<16x4xf32, #tpu.memory_space<vmem>>, vector<16x1xf32>
    %c0_13 = arith.constant 0 : index
    %c2 = arith.constant 2 : index
    %30 = vector.load %arg2[%c0_13, %c2] : memref<16x4xf32, #tpu.memory_space<vmem>>, vector<16x1xf32>
    %31 = arith.mulf %29, %28 : vector<16x1xf32>
    %32 = arith.mulf %19, %31 : vector<16x1xf32>
    %33 = arith.subf %30, %32 : vector<16x1xf32>
    %c0_14 = arith.constant 0 : index
    %c0_15 = arith.constant 0 : index
    %34 = vector.load %arg1[%c0_14, %c0_15] : memref<16x512xf32, #tpu.memory_space<vmem>>, vector<16x256xf32>
    %35 = vector.broadcast %31 : vector<16x1xf32> to vector<16x256xf32>
    %36 = arith.mulf %34, %35 : vector<16x256xf32>
    %37 = vector.broadcast %33 : vector<16x1xf32> to vector<16x256xf32>
    %38 = arith.addf %36, %37 : vector<16x256xf32>
    %c0_16 = arith.constant 0 : index
    %c0_17 = arith.constant 0 : index
    %39 = vector.load %arg3[%c0_16, %c0_17] : memref<16x512xf32, #tpu.memory_space<vmem>>, vector<16x256xf32>
    tpu.vector_store %arg3[%c0_16, %c0_17], %38 {strides = array<i32>} : memref<16x512xf32, #tpu.memory_space<vmem>>, vector<16x256xf32>,
    %c0_18 = arith.constant 0 : index
    %c1 = arith.constant 1 : index
    %40 = vector.load %arg2[%c0_18, %c1] : memref<16x4xf32, #tpu.memory_space<vmem>>, vector<16x1xf32>
    %c0_19 = arith.constant 0 : index
    %c3 = arith.constant 3 : index
    %41 = vector.load %arg2[%c0_19, %c3] : memref<16x4xf32, #tpu.memory_space<vmem>>, vector<16x1xf32>
    %42 = arith.mulf %40, %28 : vector<16x1xf32>
    %43 = arith.mulf %19, %42 : vector<16x1xf32>
    %44 = arith.subf %41, %43 : vector<16x1xf32>
    %c0_20 = arith.constant 0 : index
    %c256_21 = arith.constant 256 : index
    %45 = vector.load %arg1[%c0_20, %c256_21] : memref<16x512xf32, #tpu.memory_space<vmem>>, vector<16x256xf32>
    %46 = vector.broadcast %42 : vector<16x1xf32> to vector<16x256xf32>
    %47 = arith.mulf %45, %46 : vector<16x256xf32>
    %48 = vector.broadcast %44 : vector<16x1xf32> to vector<16x256xf32>
    %49 = arith.addf %47, %48 : vector<16x256xf32>
    %c0_22 = arith.constant 0 : index
    %c256_23 = arith.constant 256 : index
    %50 = vector.load %arg3[%c0_22, %c256_23] : memref<16x512xf32, #tpu.memory_space<vmem>>, vector<16x256xf32>
    tpu.vector_store %arg3[%c0_22, %c256_23], %49 {strides = array<i32>} : memref<16x512xf32, #tpu.memory_space<vmem>>, vector<16x256xf32>,
    return
  }
  func.func @transform_0(%arg0: i32) -> (i32, i32) {
    %c0_i32 = arith.constant 0 : i32
    %c0_i32_0 = arith.constant 0 : i32
    return %arg0, %c0_i32 : i32, i32
  }
  func.func @transform_1(%arg0: i32) -> (i32, i32) {
    %c0_i32 = arith.constant 0 : i32
    %c0_i32_0 = arith.constant 0 : i32
    return %arg0, %c0_i32 : i32, i32
  }
  func.func @transform_2(%arg0: i32) -> (i32, i32) {
    %c0_i32 = arith.constant 0 : i32
    %c0_i32_0 = arith.constant 0 : i32
    return %arg0, %c0_i32 : i32, i32
  }
}

</mosaic_0001>

<bundles_post_ra>
// kernel: tpu_custom_call.1
= control target key start
LH: loop header
LB: loop body
LE: loop exit
PB: predicated region body
PF: predicated region fallthrough
CT: control target
= control target key end

     0   :  { %7 = vsyncpa [#allocation3], 0  ;;  %s864_s0 = inlined_call_operand.hbm [shape: f32[64,512], index: 0, kind: input, shape index: {}]   ;;  %s865_s1 = inlined_call_operand.vmem [shape: f32[64,4], index: 1, kind: input, shape index: {}]   ;;  %s866_s2 = inlined_call_operand.hbm [shape: f32[64,512], index: 2, kind: output, shape index: {}]  }
   0x1   :  { %9 = vsyncpa [#allocation3 + $0x1], 0 }
   0x2   :  { %10 = vsyncpa [#allocation4], 0 }
   0x3   :  { %12 = vsyncpa [#allocation4 + $0x1], 0  ;;  %s683_s9 = smov 0   ;;  %s685_s10 = smov 0  }
   0x4   :  { %s687_s11 = smov 0   ;;  %s689_s12 = smov 0  }
   0x5 LB: > { %s704_s13 = sadd.s32 4294967295, %s657_s12   ;;  %s471_s14 = sadd.s32 4294967294, %s657_s12   ;;  %s657_s12 = sphi %s689_s12, %s875_s12   ;;  %s653_s11 = sphi %s687_s11, %s874_s11   ;;  %s649_s10 = sphi %s685_s10, %s873_s10   ;;  %s645_s9 = sphi %s683_s9, %s872_s9  }
   0x6   : > { %s708_s15 = sadd.s32 1, %s657_s12   ;;  %s25_s16 = sadd.s32 1, %s653_s11 }
   0x7   : > { %s22_s17 = ssub.s32 %s657_s12, %s708_s15  ;;  %p32_p0 = scmp.ne.s32.totalorder %s653_s11, %s649_s10 }
   0x8   : > { %p23_p1 = scmp.eq.s32.totalorder %s22_s17, 0  ;;  %p33_p2 = scmp.eq.s32.totalorder %s657_s12, 0 }
   0x9   : > { %p38_p3 = scmp.ne.s32.totalorder %s649_s10, %s645_s9  ;;  %p39_p4 = scmp.eq.s32.totalorder %s704_s13, 0 }
   0xa   : > { %s720_s18 = scalar_select %p23_p1, %s653_s11, %s25_s16  }
   0xb   : > { %p722_p5 = por %p33_p2, %p32_p0  ;;  %p726_p6 = por %p39_p4, %p38_p3 }
   0xc   : > { %p88_p7 = scmp.eq.s32.totalorder %s704_s13, 3  ;;  %p94_p8 = scmp.eq.s32.totalorder %s471_s14, 3 }
   0xd   : > { %p505_p9 = scmp.lt.s32.totalorder %s657_s12, 4  ;;  %s114_s23 = sand.u32 1, %s653_s11  }
   0xe   : > { %p732_p10 = por %p88_p7, %p32_p0  ;;  %p736_p11 = por %p94_p8, %p38_p3 }
   0xf   : > { %s490_s24 = sshll.u32 %s657_s12, 6  ;;  %s474_s25 = sshll.u32 %s114_s23, 6 }
  0x10   : > { %s124_s28 = scalar_lea.hbm %s864_s0, %s490_s24  ;;  %s118_s30 = scalar_lea.vmem [#allocation2], %s474_s25 }
  0x11   : > { %s125_s29 = sshll.u32 %s124_s28, 4  ;;  %s127_s3 = sshll.u32 %s118_s30, 4  ;;  %s126_s29 = int_to_ptr.hbm [resolvable:$true] %s125_s29  ;;  %s128_s3 = int_to_ptr.vmem [resolvable:$true] %s127_s3 }
  0x12   : > { %p747_p12 = pnand %p505_p9, %p722_p5  ;;  %p478_p13 = scmp.ge.s32.totalorder %s657_s12, 1 }
  0x13   : > { %p144_p0 = scmp.lt.s32.totalorder %s657_s12, 5  ;;  %s115_s5 = scalar_lea.sflag [#allocation3], %s114_s23 }
  0x14   : > { %s561_s6 = sshra.s32 %s126_s29, 4  ;;  %p565_p2 = pneg %p747_p12  ;;  %s562_s6 = int_to_ptr.hbm [resolvable:$true] %s561_s6 }
  0x15   : > { %s563_s7 = scalar_lea.hbm %s562_s6, 64  ;;  %s568_s16 = scalar_lea.hbm %s864_s0, 256 }
  0x16   : > { %p564_p1 = scmp.ne.s32.totalorder %s562_s6, %s563_s7  ;;  %p569_p5 = scmp.lt.s32.totalorder %s562_s6, %s864_s0 }
  0x17   : > { %p570_p7 = scmp.lt.s32.totalorder %s568_s16, %s563_s7 }
  0x18   : > { %p566_p3 = pnand %p565_p2, %p564_p1 }
  0x19   : > { %p571_p8 = por %p570_p7, %p569_p5 }
  0x1a   : > { %p567_p4 = pneg %p566_p3 }
  0x1c   : > { %p572_p9 = pnand %p571_p8, %p567_p4 }
  0x1e   : > { %575 = shalt.err (!%p572_p9)
}
  0x1f   : > { %s659_s23 = smov 512   ;;  %s660_s24 = smov 32  }
  0x20   : > { %500 = dma.hbm_to_vmem [thread:$0]  (!%p747_p12), %s126_s29, 1024, %s128_s3, %s115_s5, %s659_s23, %s659_s23, %s660_s24  }
  0x21   : > { %p145_p1 = pnand %p478_p13, %p144_p0 }
  0x22   : > { %s768_s25 = sand.u32 (!%p145_p1), 1, %s649_s10  }
  0x23   : > { %148 = sbr.rel (%p145_p1) target bundleno = 447 (0x1bf), region = 28  ;;  %s479_s26 = sshll.u32 (!%p145_p1), %s768_s25, 6 }
  0x24   : > { %s151_s27 = scalar_lea.sflag (!%p145_p1), [#allocation3], %s768_s25  ;;  %s154_s28 = scalar_lea.vmem (!%p145_p1), [#allocation2], %s479_s26 }
  0x28   : > { %636 = dma.done.wait (%p726_p6), %s151_s27, 1024  }
  0x29   : > { %638 = vsyncadd (%p726_p6), %s151_s27, 4294966272  ;;  %v778_v0 = vld [vmem:[%s154_s28 + $0x10] sm:$0xff]  ;;  %v780_v1 = vld [vmem:[%s154_s28 + $0x18] sm:$0xff]  ;;  %v661_v40 = vmov 1   ;;  %v662_v41 = vmov 0   ;;  %s481_s20 = sshll.u32 %s704_s13, 1 }
  0x2a   : > { %v782_v2 = vld [vmem:[%s154_s28] sm:$0xff]  ;;  %v217_v3 = vadd.f32 %v780_v1, %v778_v0  ;;  %v786_v4 = vld [vmem:[%s154_s28 + $0x8] sm:$0xff]  ;;  %v794_v8 = vld [vmem:[%s154_s28 + $0x30] sm:$0xff]  ;;  %v225_v20 = vmul.f32 %v778_v0, %v778_v0  ;;  %v226_v21 = vmul.f32 %v780_v1, %v780_v1  ;;  %550 = vset.pattern.permute.xlu1 %v661_v40  ;;  %548 = vset.pattern.permute.xlu0 %v662_v41  ;;  %p183_p6 = scmp.lt.s32.totalorder %s481_s20, 7  ;;  %s663_s5 = smov 2  }
  0x2b   : > { %v201_v5 = vmul.f32 %v782_v2, %v782_v2  ;;  %v193_v6 = vadd.f32 %v786_v4, %v782_v2  ;;  %v202_v7 = vmul.f32 %v786_v4, %v786_v4  ;;  %v796_v9 = vld [vmem:[%s154_s28 + $0x38] sm:$0xff]  ;;  %v798_v11 = vld [vmem:[%s154_s28 + $0x20] sm:$0xff]  ;;  %v800_v12 = vld [vmem:[%s154_s28 + $0x28] sm:$0xff]  ;;  %v227_v18 = vmul.f32 %v794_v8, %v794_v8  ;;  %549 = vset.pattern.permute.xlu2 %v662_v41  ;;  %s180_s6 = scalar_lea.vmem [#allocation5], %s479_s26  ;;  %s492_s7 = sshll.u32 %s704_s13, 6 }
  0x2c   : > { %218 = vadd.xlane.f32.xlu1 %v217_v3  ;;  %v203_v13 = vmul.f32 %v798_v11, %v798_v11  ;;  %v204_v14 = vmul.f32 %v800_v12, %v800_v12  ;;  %v220_v15 = vadd.f32 %v796_v9, %v794_v8  ;;  %v196_v16 = vadd.f32 %v800_v12, %v798_v11  ;;  %s877_s20 = smov (!%p183_p6, %s481_s20), 7  ;;  %s382_s16 = scalar_lea.hbm %s866_s2, %s492_s7 }
  0x2d   : > { %194 = vadd.xlane.f32.xlu0 %v193_v6  ;;  %v205_v10 = vadd.f32 %v202_v7, %v201_v5  ;;  %v228_v19 = vmul.f32 %v796_v9, %v796_v9  ;;  %v229_v23 = vadd.f32 %v226_v21, %v225_v20  ;;  %s482_s29 = sshll.u32 %s877_s20, 3  ;;  %s383_s17 = sshll.u32 %s180_s6, 4  ;;  %s384_s17 = int_to_ptr.vmem [resolvable:$true] %s383_s17 }
  0x2e   : > { %v208_v17 = vadd.f32 %v204_v14, %v203_v13  ;;  %s186_s4 = scalar_lea.vmem %s865_s1, %s482_s29  ;;  %v664_v14 = vmov 2   ;;  %s385_s19 = sshll.u32 %s382_s16, 4  ;;  %s386_s19 = int_to_ptr.hbm [resolvable:$true] %s385_s19 }
  0x2f   : > { %206 = vadd.xlane.f32.xlu2 %v205_v10  ;;  %v232_v22 = vadd.f32 %v228_v19, %v227_v18  ;;  %v270_v61 = vld [vmem:[%s186_s4 + $0x8] sm:$0xff]  ;;  %v317_v63 = vld [vmem:[%s186_s4] sm:$0xff]  ;;  %s370_s23 = scalar_lea.sflag [#allocation4], %s768_s25  ;;  %s605_s13 = sshra.s32 %s386_s19, 4  ;;  %s606_s13 = int_to_ptr.hbm [resolvable:$true] %s605_s13 }
  0x30   : > { %s607_s24 = scalar_lea.hbm %s606_s13, 64  ;;  %s611_s28 = scalar_lea.hbm %s866_s2, 256 }
  0x31   : > { %p608_p12 = scmp.ne.s32.totalorder %s606_s13, %s607_s24  ;;  %p612_p2 = scmp.lt.s32.totalorder %s606_s13, %s866_s2 }
  0x32   : > { %p613_p3 = scmp.lt.s32.totalorder %s611_s28, %s607_s24 }
  0x33   : > { %p609_p13 = pnand %p608_p12, %p732_p10 }
  0x34   : > { %221 = vadd.xlane.f32.xlu1 %v220_v15  ;;  %v665_v15 = vmov 3   ;;  %p614_p4 = por %p613_p3, %p612_p2 }
  0x35   : > { %197 = vadd.xlane.f32.xlu0 %v196_v16  ;;  %p610_p0 = pneg %p609_p13 }
  0x37   : > { %209 = vadd.xlane.f32.xlu2 %v208_v17  ;;  %p615_p5 = pnand %p614_p4, %p610_p0 }
  0x3c   : > { %233 = vadd.xlane.f32.xlu1 %v232_v22 }
  0x3d   : > { %230 = vadd.xlane.f32.xlu0 %v229_v23 }
  0x9f   : > { %v219_v24 = vpop.xlane.xlu1 %218 }
  0xa0   : > { %v195_v25 = vpop.xlane.xlu0 %194 }
  0xa1   : > { %v223_v30 = vadd.f32 %v219_v24, %v195_v25 }
  0xa2   : > { %v207_v26 = vpop.xlane.xlu2 %206 }
  0xa3   : > { %v237_v33 = vmul.f32 0.001953125, %v223_v30 }
  0xa5   : > { %v241_v42 = vmul.f32 %v237_v33, %v237_v33 }
  0xa7   : > { %v222_v27 = vpop.xlane.xlu1 %221 }
  0xa8   : > { %v198_v28 = vpop.xlane.xlu0 %197 }
  0xa9   : > { %v224_v29 = vadd.f32 %v222_v27, %v198_v28 }
  0xaa   : > { %v210_v31 = vpop.xlane.xlu2 %209 }
  0xab   : > { %v238_v32 = vmul.f32 0.001953125, %v224_v29 }
  0xad   : > { %v242_v39 = vmul.f32 %v238_v32, %v238_v32 }
  0xaf   : > { %v234_v34 = vpop.xlane.xlu1 %233 }
  0xb0   : > { %v236_v35 = vadd.f32 %v234_v34, %v210_v31  ;;  %v231_v36 = vpop.xlane.xlu0 %230 }
  0xb1   : > { %v235_v37 = vadd.f32 %v231_v36, %v207_v26 }
  0xb2   : > { %v240_v38 = vmul.f32 0.001953125, %v236_v35 }
  0xb3   : > { %v239_v43 = vmul.f32 0.001953125, %v235_v37 }
  0xb4   : > { %v244_v44 = vsub.f32 %v240_v38, %v242_v39 }
  0xb5   : > { %v243_v45 = vsub.f32 %v239_v43, %v241_v42 }
  0xb6   : > { %v246_v46 = vmax.f32 %v244_v44, 0.0 }
  0xb7   : > { %v245_v47 = vmax.f32 %v243_v45, 0.0 }
  0xb8   : > { %v248_v48 = vadd.f32 1e-06, %v246_v46 }
  0xb9   : > { %v247_v49 = vadd.f32 1e-06, %v245_v47 }
  0xba   : > { %557 = vrsqrt.f32 %v248_v48  ;;  %vm265_vm2 = vweird.f32 %v248_v48 }
  0xbb   : > { %559 = vrsqrt.f32 %v247_v49  ;;  %vm255_vm3 = vweird.f32 %v247_v49 }
  0xc0   : > { %v558_v50 = vpop.eup %557 }
  0xc1   : > { %v560_v51 = vpop.eup %559  ;;  %v260_v52 = vmul.f32 %v558_v50, %v248_v48  ;;  %vm266_vm0 = vweird.f32 %v558_v50 }
  0xc2   : > { %v250_v53 = vmul.f32 %v560_v51, %v247_v49  ;;  %vm256_vm1 = vweird.f32 %v560_v51  ;;  %vm267_vm4 = vmor %vm265_vm2, %vm266_vm0 }
  0xc3   : > { %v261_v54 = vmul.f32 %v558_v50, %v260_v52  ;;  %vm257_vm5 = vmor %vm255_vm3, %vm256_vm1 }
  0xc4   : > { %v251_v55 = vmul.f32 %v560_v51, %v250_v53 }
  0xc5   : > { %v262_v56 = vmul.f32 0.5, %v261_v54 }
  0xc6   : > { %v252_v57 = vmul.f32 0.5, %v251_v55 }
  0xc7   : > { %v263_v58 = vsub.f32 1.5, %v262_v56 }
  0xc8   : > { %v253_v59 = vsub.f32 1.5, %v252_v57 }
  0xc9   : > { %v264_v60 = vmul.f32 %v558_v50, %v263_v58 }
  0xca   : > { %v254_v62 = vmul.f32 %v560_v51, %v253_v59 }
  0xcb   : > { %v268_v3 = vsel %vm267_vm4, %v558_v50, %v264_v60 }
  0xcc   : > { %v272_v5 = vmul.f32 %v270_v61, %v268_v3  ;;  %v258_v6 = vsel %vm257_vm5, %v560_v51, %v254_v62 }
  0xcd   : > { %v319_v7 = vmul.f32 %v317_v63, %v258_v6 }
  0xce   : > { %v274_v10 = vmul.f32 %v272_v5, %v238_v32 }
  0xcf   : > { %v321_v13 = vmul.f32 %v319_v7, %v237_v33 }
  0xd0   : > { %279 = vrot.lane.b32.xlu0 %v274_v10, %s663_s5 }
  0xd1   : > { %325 = vrot.lane.b32.xlu1 %v321_v13, %s663_s5  ;;  %277 = vrot.lane.b32.xlu2 %v321_v13, %s663_s5 }
  0xd8   : > { %287 = vperm.xlu0 %548, %v319_v7  }
  0xd9   : > { %339 = vperm.xlu1 %550, %v319_v7   ;;  %327 = vrot.lane.b32.xlu2 %v274_v10, %s663_s5 }
  0xe0   : > { %553 = vset.pattern.permute.xlu0 %v664_v14 }
  0xe1   : > { %292 = vperm.xlu2 %549, %v272_v5   ;;  %552 = vset.pattern.permute.xlu1 %v664_v14 }
  0xe9   : > { %551 = vset.pattern.permute.xlu2 %v661_v40 }
  0xea   : > { %344 = vperm.xlu2 %551, %v272_v5  }
  0xf2   : > { %554 = vset.pattern.permute.xlu2 %v665_v15 }
 0x12b   : > { %v278_v16 = vpop.permute.xlu2 %277 }
 0x12c   : > { %v283_v17 = vsub.f32 %v317_v63, %v278_v16 }
 0x12e   : > { %301 = vperm.xlu1 %552, %v283_v17  }
 0x133   : > { %v328_v18 = vpop.permute.xlu2 %327 }
 0x134   : > { %v332_v19 = vsub.f32 %v270_v61, %v328_v18 }
 0x136   : > { %555 = vset.pattern.permute.xlu1 %v665_v15 }
 0x137   : > { %358 = vperm.xlu1 %555, %v332_v19  }
 0x13b   : > { %v293_v24 = vpop.permute.xlu2 %292 }
 0x13c   : > { %v297_v39 = vmul.f32 %v293_v24, %v798_v11  ;;  %v298_v40 = vmul.f32 %v293_v24, %v800_v12 }
 0x142   : > { %v280_v20 = vpop.permute.xlu0 %279 }
 0x143   : > { %v326_v21 = vpop.permute.xlu1 %325  ;;  %v284_v22 = vsub.f32 %v270_v61, %v280_v20 }
 0x144   : > { %v331_v23 = vsub.f32 %v317_v63, %v326_v21  ;;  %v345_v25 = vpop.permute.xlu2 %344 }
 0x145   : > { %306 = vperm.xlu0 %553, %v284_v22  }
 0x146   : > { %353 = vperm.xlu2 %554, %v331_v23  }
 0x14a   : > { %v288_v27 = vpop.permute.xlu0 %287 }
 0x14b   : > { %v340_v26 = vpop.permute.xlu1 %339  ;;  %v295_v29 = vmul.f32 %v288_v27, %v782_v2  ;;  %v296_v30 = vmul.f32 %v288_v27, %v786_v4  ;;  %v350_v2 = vmul.f32 %v345_v25, %v796_v9 }
 0x14c   : > { %v347_v28 = vmul.f32 %v340_v26, %v778_v0  ;;  %v348_v31 = vmul.f32 %v340_v26, %v780_v1  ;;  %v349_v0 = vmul.f32 %v345_v25, %v794_v8 }
 0x14d   : > { %556 = vset.pattern.permute.xlu0 %v665_v15 }
 0x1a0   : > { %v302_v32 = vpop.permute.xlu1 %301  ;;  %v354_v33 = vpop.permute.xlu2 %353 }
 0x1a1   : > { %v309_v34 = vadd.f32 %v302_v32, %v295_v29  ;;  %v310_v35 = vadd.f32 %v302_v32, %v296_v30  ;;  %v361_v36 = vadd.f32 %v354_v33, %v347_v28  ;;  %v362_v37 = vadd.f32 %v354_v33, %v348_v31 }
 0x1a3   : > { %313 = vst [vmem:[%s180_s6] sm:$0xff] %v309_v34 }
 0x1a4   : > { %314 = vst [vmem:[%s180_s6 + $0x8] sm:$0xff] %v310_v35 }
 0x1a5   : > { %365 = vst [vmem:[%s180_s6 + $0x10] sm:$0xff] %v361_v36 }
 0x1a6   : > { %366 = vst [vmem:[%s180_s6 + $0x18] sm:$0xff] %v362_v37 }
 0x1a9   : > { %v359_v4 = vpop.permute.xlu1 %358 }
 0x1aa   : > { %v363_v38 = vadd.f32 %v359_v4, %v349_v0  ;;  %v364_v1 = vadd.f32 %v359_v4, %v350_v2 }
 0x1ac   : > { %367 = vst [vmem:[%s180_s6 + $0x30] sm:$0xff] %v363_v38 }
 0x1ad   : > { %368 = vst [vmem:[%s180_s6 + $0x38] sm:$0xff] %v364_v1 }
 0x1b7   : > { %v307_v8 = vpop.permute.xlu0 %306 }
 0x1b8   : > { %v311_v9 = vadd.f32 %v307_v8, %v297_v39  ;;  %v312_v41 = vadd.f32 %v307_v8, %v298_v40 }
 0x1ba   : > { %315 = vst [vmem:[%s180_s6 + $0x20] sm:$0xff] %v311_v9 }
 0x1bb   : > { %316 = vst [vmem:[%s180_s6 + $0x28] sm:$0xff] %v312_v41 }
 0x1bc   : > { %618 = shalt.err (!%p615_p5)
}
 0x1bd   : > { %s666_s25 = smov 512   ;;  %s667_s30 = smov 32  }
 0x1be   : > { %495 = dma.vmem_to_hbm [thread:$0]  (%p732_p10), %s384_s17, 1024, %s386_s19, %s370_s23, %s666_s25, %s666_s25, %s667_s30  }
 0x1bf PF: > { %p506_p7 = scmp.ge.s32.totalorder %s657_s12, 2  ;;  %s400_s3 = sand.u32 1, %s645_s9  }
 0x1c0   : > { %s401_s4 = scalar_lea.sflag [#allocation4], %s400_s3 }
 0x1c1   : > { %p502_p8 = pnand %p506_p7, %p736_p11 }
 0x1c3   : > { %p503_p9 = pneg %p502_p8 }
 0x1c5   : > { %640 = dma.done.wait (%p503_p9), %s401_s4, 1024  }
 0x1c6   : > { %642 = vsyncadd (%p503_p9), %s401_s4, 4294966272  ;;  %p15_p1 = scmp.ge.s32.totalorder %s708_s15, 6   ;;  %s872_s9 = smov %s649_s10 }
 0x1c7   : > { %s873_s10 = smov %s653_s11  ;;  %s874_s11 = smov %s720_s18 }
 0x1c8   : > { %s875_s12 = smov %s708_s15  ;;  %17 = sbr.rel (!%p15_p1) target bundleno = 5 (0x5), region = 76 }
 0x1cd   :  { %407 = vsyncpa [#allocation3], 1 }
 0x1ce   :  { %409 = vsyncpa [#allocation3 + $0x1], 1 }
 0x1cf   :  { %410 = vsyncpa [#allocation4], 1 }
 0x1d0   :  { %412 = vsyncpa [#allocation4 + $0x1], 1 }

</bundles_post_ra>
